<compile_context>
chip_gen: v7x
topology: tpu7x:2x2x1
jax: 0.10.0
libtpu: 0.0.40
codegen_flags: <defaults>
</compile_context>

<pallas_src>
import functools
import math

import jax
import jax.numpy as jnp
from jax.experimental import pallas as pl
from jax.experimental.pallas import tpu as pltpu


def _round_up(x, m):
    return ((x + m - 1) // m) * m


def _cdiv(a, b):
    return (a + b - 1) // b


# ----------------------------- Pallas kernel --------------------------------

def _fused_mlp_kernel(*refs, n_layers, use_softmax, n_out_real, mask_padded):
    """refs = (x_ref, w0_ref, b0_ref, ..., w{L-1}_ref, b{L-1}_ref, o_ref).

    x_ref : (TILE_B, D0_pad)      bf16
    wi_ref: (Di_pad, D{i+1}_pad)  bf16 (pre-transposed, zero-padded)
    bi_ref: (1, D{i+1}_pad)       f32  (zero-padded)
    o_ref : (TILE_B, DL_pad)      f32
    """
    x_ref = refs[0]
    o_ref = refs[-1]
    p_refs = refs[1:-1]

    h = x_ref[...]                               # bf16 activations feed the MXU
    y = None
    for li in range(n_layers):
        w_ref = p_refs[2 * li]
        b_ref = p_refs[2 * li + 1]
        y = jnp.dot(h, w_ref[...], preferred_element_type=jnp.float32)
        y = y + b_ref[...]                       # f32 bias add
        if li < n_layers - 1:
            # Dropout is identity at inference; ReLU, back to bf16 for next dot.
            h = jnp.maximum(y, 0.0).astype(jnp.bfloat16)

    if use_softmax:
        if mask_padded:
            # Mask padded output columns so they don't pollute the softmax.
            col = jax.lax.broadcasted_iota(jnp.int32, y.shape, dimension=1)
            y = jnp.where(col < n_out_real, y, jnp.float32(-1e30))
        m = jnp.max(y, axis=1, keepdims=True)
        e = jnp.exp(y - m)
        s = jnp.sum(e, axis=1, keepdims=True)
        y = e / s                                # exact divide: rows sum to 1
    o_ref[...] = y.astype(o_ref.dtype)


# ----------------------------- Module wrapper --------------------------------

class FCLayersPallas:
    """Pallas re-implementation of FCLayers.forward (inference semantics)."""

    MAX_TILE_B = 256  # rows per batch tile; vreg/VMEM friendly on v5e/v6e/v7x

    def __init__(self, n_input, n_output, hidden_layer_sizes=(100,),
                 use_softmax=True, dropout=0.2, key=None):
        del dropout  # nn.Dropout is identity at inference (see TODO above)
        self.use_softmax = use_softmax
        self.n_output = n_output
        dims = [n_input] + list(hidden_layer_sizes) + [n_output]
        self.dims = dims
        # Lane-dense feature dims.  (On v6e/v7x, hidden sizes that are
        # multiples of 256 use the 256x256 MXU fully; padding stays at 128.)
        self.dims_pad = [_round_up(d, 128) for d in dims]
        self.n_layers = len(dims) - 1
        self._single_buffer_ok = True  # flips to False if Buffered(1) rejected

        if key is None:
            key = jax.random.PRNGKey(0)

        def init_linear(k, fan_in, fan_out):
            # PyTorch nn.Linear default init: U(-1/sqrt(fan_in), 1/sqrt(fan_in))
            kw, kb = jax.random.split(k)
            bound = 1.0 / math.sqrt(fan_in)
            w = jax.random.uniform(kw, (fan_out, fan_in), jnp.float32, -bound, bound)
            b = jax.random.uniform(kb, (fan_out,), jnp.float32, -bound, bound)
            return w, b

        # original (out, in) f32 params, kept for the reference check
        self.params = []
        for d_in, d_out in zip(dims[:-1], dims[1:]):
            key, sub = jax.random.split(key)
            self.params.append(init_linear(sub, d_in, d_out))

        # kernel-ready params: pre-transposed to (in, out), zero-padded to
        # multiples of 128, weights in bf16 (f32 accumulation in-kernel).
        self._wts = []
        self._brows = []
        for li, (w, b) in enumerate(self.params):
            d_in_p, d_out_p = self.dims_pad[li], self.dims_pad[li + 1]
            w_t = jnp.zeros((d_in_p, d_out_p), jnp.float32)
            w_t = w_t.at[:w.shape[1], :w.shape[0]].set(w.T)
            b_row = jnp.zeros((1, d_out_p), jnp.float32)
            b_row = b_row.at[0, :b.shape[0]].set(b)
            self._wts.append(w_t.astype(jnp.bfloat16))
            self._brows.append(b_row)

    # ---- VMEM budget: weights (single-buffered) + pipelined tiles + scratch
    def _vmem_budget_bytes(self, tile_b):
        weight_bytes = sum(int(w.size) * 2 for w in self._wts)       # bf16
        bias_bytes = sum(int(b.size) * 4 for b in self._brows)       # f32
        x_tile = 2 * tile_b * self.dims_pad[0] * 2                   # 2x bf16 input tile
        out_tile = 2 * tile_b * self.dims_pad[-1] * 4                # 2x f32 output tile
        act = 2 * tile_b * max(self.dims_pad) * 4                    # h/y intermediates
        need = int(1.25 * (weight_bytes + bias_bytes + x_tile + out_tile + act)) + (4 << 20)
        cap = 100 << 20                                              # v5e/v6e: 128 MiB phys
        try:
            # v7x: 64 MiB per TensorCore -> cap well below that.
            cap = min(cap, int(pltpu.get_tpu_info().vmem_capacity_bytes) - (8 << 20))
        except Exception:
            cap = 48 << 20                                           # safe on every chip
        return min(cap, max(32 << 20, need))

    def _pallas_forward(self, x, tile_b, num_tiles, single_buffer_weights):
        d_in_pad = self.dims_pad[0]
        d_out_pad = self.dims_pad[-1]

        kernel = functools.partial(
            _fused_mlp_kernel,
            n_layers=self.n_layers,
            use_softmax=self.use_softmax,
            n_out_real=self.n_output,
            mask_padded=(d_out_pad != self.n_output),
        )

        weight_mode = {}
        if single_buffer_weights:
            # Constant index_map -> fetched once; single buffer halves their
            # VMEM footprint vs. the default double-buffering.
            weight_mode = dict(pipeline_mode=pl.Buffered(1))

        in_specs = [pl.BlockSpec((tile_b, d_in_pad), lambda i: (i, 0))]
        flat_params = []
        for w_t, b_row in zip(self._wts, self._brows):
            in_specs.append(pl.BlockSpec(w_t.shape, lambda i: (0, 0), **weight_mode))
            in_specs.append(pl.BlockSpec(b_row.shape, lambda i: (0, 0), **weight_mode))
            flat_params.extend([w_t, b_row])

        return pl.pallas_call(
            kernel,
            out_shape=jax.ShapeDtypeStruct((tile_b * num_tiles, d_out_pad), jnp.float32),
            grid=(num_tiles,),
            in_specs=in_specs,
            out_specs=pl.BlockSpec((tile_b, d_out_pad), lambda i: (i, 0)),
            compiler_params=pltpu.CompilerParams(
                dimension_semantics=("parallel",),          # megacore sharding on v7x
                vmem_limit_bytes=self._vmem_budget_bytes(tile_b),
            ),
        )(x, *flat_params)

    def __call__(self, X):
        B, d_in = X.shape
        assert d_in == self.dims[0]
        d_in_pad = self.dims_pad[0]

        # Balanced batch tiles, 16-row aligned (bf16 sublane packing).
        B16 = _round_up(B, 16)
        num_tiles = _cdiv(B16, self.MAX_TILE_B)
        # Ensure >= 2 grid steps whenever possible: ~free on 1-TC chips
        # (v5e/v6e, ~0.35us/step) and keeps both v7x TensorCores busy.
        if num_tiles == 1 and B16 >= 32:
            num_tiles = 2
        tile_b = _round_up(_cdiv(B16, num_tiles), 16)
        b_pad = tile_b * num_tiles

        # Cast once; pad only if actually needed (avoids an extra HBM pass).
        x = X.astype(jnp.bfloat16)
        if b_pad != B or d_in_pad != d_in:
            x = jnp.pad(x, ((0, b_pad - B), (0, d_in_pad - d_in)))

        if self._single_buffer_ok:
            try:
                out = self._pallas_forward(x, tile_b, num_tiles,
                                           single_buffer_weights=True)
            except Exception:
                # pl.Buffered(1) unsupported on this jax/Mosaic build -> fall back.
                self._single_buffer_ok = False
                out = self._pallas_forward(x, tile_b, num_tiles,
                                           single_buffer_weights=False)
        else:
            out = self._pallas_forward(x, tile_b, num_tiles,
                                       single_buffer_weights=False)

        return out[:B, :self.n_output]


# --------------------------------- main --------------------------------------

if __name__ == "__main__":
    key = jax.random.PRNGKey(0)
    k_x, k_p, k_x2 = jax.random.split(key, 3)

    n_input = 32
    hidden_layer_sizes = (64,)
    n_output = 16

    model = FCLayersPallas(n_input=n_input, n_output=n_output,
                           hidden_layer_sizes=hidden_layer_sizes,
                           use_softmax=True, dropout=0.2, key=k_p)

    # pure-JAX reference mirroring the kernel's bf16-input / f32-accum math
    def ref_forward(x):
        h = x
        for li, (w, b) in enumerate(model.params):
            y = jnp.dot(h.astype(jnp.bfloat16), w.T.astype(jnp.bfloat16),
                        preferred_element_type=jnp.float32) + b
            h = jnp.maximum(y, 0.0) if li < model.n_layers - 1 else y
        return jax.nn.softmax(h, axis=1)

    # exercise both the single-tile and the multi-tile (split-grid) paths
    for name, bsz, kk in (("single-tile", 8, k_x), ("multi-tile", 40, k_x2)):
        x = jax.random.normal(kk, (bsz, n_input), dtype=jnp.float32)
        out = jax.block_until_ready(model(x))
        ref = ref_forward(x)

        assert out.shape == (bsz, n_output), (name, out.shape)
        err = float(jnp.max(jnp.abs(out - ref)))
        assert err < 2e-3, f"{name}: max abs err = {err}"
        # exact softmax divide -> rows sum to 1 tightly
        assert jnp.allclose(jnp.sum(out, axis=1), 1.0, atol=1e-4), name

    print("KERNEL_OK")
</pallas_src>

<mosaic_0001>
module attributes {stable_mosaic.version = 11 : i64} {
  func.func @_fused_mlp_kernel(%arg0: i32, %arg1: memref<16x128xbf16, #tpu.memory_space<vmem>>, %arg2: memref<128x128xbf16, #tpu.memory_space<vmem>>, %arg3: memref<1x128xf32, #tpu.memory_space<vmem>>, %arg4: memref<128x128xbf16, #tpu.memory_space<vmem>>, %arg5: memref<1x128xf32, #tpu.memory_space<vmem>>, %arg6: memref<16x128xf32, #tpu.memory_space<vmem>>) attributes {dimension_semantics = [#tpu.dimension_semantics<parallel>], iteration_bounds = array<i64: 1>, scalar_prefetch = 0 : i64, scratch_operands = 0 : i64, tpu.core_type = #tpu.core_type<tc>, window_params = [{transform_indices = @transform_0, window_bounds = array<i64: 16, 128>}, {pipeline_mode = #tpu.pipeline_mode<synchronous>, transform_indices = @transform_1, window_bounds = array<i64: 128, 128>}, {pipeline_mode = #tpu.pipeline_mode<synchronous>, transform_indices = @transform_2, window_bounds = array<i64: 1, 128>}, {pipeline_mode = #tpu.pipeline_mode<synchronous>, transform_indices = @transform_3, window_bounds = array<i64: 128, 128>}, {pipeline_mode = #tpu.pipeline_mode<synchronous>, transform_indices = @transform_4, window_bounds = array<i64: 1, 128>}, {transform_indices = @transform_5, window_bounds = array<i64: 16, 128>}]} {
    %c0 = arith.constant 0 : index
    %c0_0 = arith.constant 0 : index
    %0 = vector.load %arg1[%c0, %c0_0] : memref<16x128xbf16, #tpu.memory_space<vmem>>, vector<16x128xbf16>
    %c0_1 = arith.constant 0 : index
    %c0_2 = arith.constant 0 : index
    %1 = vector.load %arg2[%c0_1, %c0_2] : memref<128x128xbf16, #tpu.memory_space<vmem>>, vector<128x128xbf16>
    %cst = arith.constant dense<0.000000e+00> : vector<16x128xf32>
    %2 = tpu.matmul %0, %1, %cst {dimension_numbers = #tpu.dot_dimension_numbers<[1], [0], [0], [1], [0, 0, 1, 1], [], []>} : vector<16x128xbf16>, vector<128x128xbf16>, vector<16x128xf32> -> vector<16x128xf32>
    %c0_3 = arith.constant 0 : index
    %c0_4 = arith.constant 0 : index
    %3 = vector.load %arg3[%c0_3, %c0_4] : memref<1x128xf32, #tpu.memory_space<vmem>>, vector<1x128xf32>
    %4 = vector.broadcast %3 : vector<1x128xf32> to vector<16x128xf32>
    %5 = arith.addf %2, %4 : vector<16x128xf32>
    %cst_5 = arith.constant 0.000000e+00 : f32
    %6 = vector.broadcast %cst_5 : f32 to vector<16x128xf32>
    %7 = arith.maximumf %5, %6 : vector<16x128xf32>
    %8 = arith.truncf %7 : vector<16x128xf32> to vector<16x128xbf16>
    %c0_6 = arith.constant 0 : index
    %c0_7 = arith.constant 0 : index
    %9 = vector.load %arg4[%c0_6, %c0_7] : memref<128x128xbf16, #tpu.memory_space<vmem>>, vector<128x128xbf16>
    %cst_8 = arith.constant dense<0.000000e+00> : vector<16x128xf32>
    %10 = tpu.matmul %8, %9, %cst_8 {dimension_numbers = #tpu.dot_dimension_numbers<[1], [0], [0], [1], [0, 0, 1, 1], [], []>} : vector<16x128xbf16>, vector<128x128xbf16>, vector<16x128xf32> -> vector<16x128xf32>
    %c0_9 = arith.constant 0 : index
    %c0_10 = arith.constant 0 : index
    %11 = vector.load %arg5[%c0_9, %c0_10] : memref<1x128xf32, #tpu.memory_space<vmem>>, vector<1x128xf32>
    %12 = vector.broadcast %11 : vector<1x128xf32> to vector<16x128xf32>
    %13 = arith.addf %10, %12 : vector<16x128xf32>
    %14 = tpu.iota {dimensions = array<i32: 1>} : vector<16x128xi32>
    %c16_i32 = arith.constant 16 : i32
    %15 = vector.broadcast %c16_i32 : i32 to vector<16x128xi32>
    %16 = arith.cmpi slt, %14, %15 : vector<16x128xi32>
    %cst_11 = arith.constant -1.000000e+30 : f32
    %17 = vector.broadcast %cst_11 : f32 to vector<16x128xf32>
    %18 = arith.select %16, %13, %17 : vector<16x128xi1>, vector<16x128xf32>
    %cst_12 = arith.constant dense<0xFF800000> : vector<16xf32>
    %19 = vector.multi_reduction <maximumf>, %18, %cst_12 [1] : vector<16x128xf32> to vector<16xf32>
    %20 = vector.shape_cast %19 : vector<16xf32> to vector<16x1xf32>
    %21 = vector.broadcast %20 : vector<16x1xf32> to vector<16x128xf32>
    %22 = arith.subf %18, %21 : vector<16x128xf32>
    %23 = math.exp %22 : vector<16x128xf32>
    %cst_13 = arith.constant dense<0.000000e+00> : vector<16xf32>
    %24 = vector.multi_reduction <add>, %23, %cst_13 [1] : vector<16x128xf32> to vector<16xf32>
    %25 = vector.shape_cast %24 : vector<16xf32> to vector<16x1xf32>
    %26 = vector.broadcast %25 : vector<16x1xf32> to vector<16x128xf32>
    %27 = arith.divf %23, %26 : vector<16x128xf32>
    %c0_14 = arith.constant 0 : index
    %c0_15 = arith.constant 0 : index
    %28 = vector.load %arg6[%c0_14, %c0_15] : memref<16x128xf32, #tpu.memory_space<vmem>>, vector<16x128xf32>
    tpu.vector_store %arg6[%c0_14, %c0_15], %27 {strides = array<i32>} : memref<16x128xf32, #tpu.memory_space<vmem>>, vector<16x128xf32>,
    return
  }
  func.func @transform_0(%arg0: i32) -> (i32, i32) {
    %c0_i32 = arith.constant 0 : i32
    %c0_i32_0 = arith.constant 0 : i32
    return %arg0, %c0_i32 : i32, i32
  }
  func.func @transform_1(%arg0: i32) -> (i32, i32) {
    %c0_i32 = arith.constant 0 : i32
    %c0_i32_0 = arith.constant 0 : i32
    %c0_i32_1 = arith.constant 0 : i32
    return %c0_i32, %c0_i32_0 : i32, i32
  }
  func.func @transform_2(%arg0: i32) -> (i32, i32) {
    %c0_i32 = arith.constant 0 : i32
    %c0_i32_0 = arith.constant 0 : i32
    %c0_i32_1 = arith.constant 0 : i32
    return %c0_i32, %c0_i32_0 : i32, i32
  }
  func.func @transform_3(%arg0: i32) -> (i32, i32) {
    %c0_i32 = arith.constant 0 : i32
    %c0_i32_0 = arith.constant 0 : i32
    %c0_i32_1 = arith.constant 0 : i32
    return %c0_i32, %c0_i32_0 : i32, i32
  }
  func.func @transform_4(%arg0: i32) -> (i32, i32) {
    %c0_i32 = arith.constant 0 : i32
    %c0_i32_0 = arith.constant 0 : i32
    %c0_i32_1 = arith.constant 0 : i32
    return %c0_i32, %c0_i32_0 : i32, i32
  }
  func.func @transform_5(%arg0: i32) -> (i32, i32) {
    %c0_i32 = arith.constant 0 : i32
    %c0_i32_0 = arith.constant 0 : i32
    return %arg0, %c0_i32 : i32, i32
  }
}

module attributes {stable_mosaic.version = 11 : i64} {
  func.func @_fused_mlp_kernel(%arg0: i32, %arg1: memref<16x128xbf16, #tpu.memory_space<vmem>>, %arg2: memref<128x128xbf16, #tpu.memory_space<vmem>>, %arg3: memref<1x128xf32, #tpu.memory_space<vmem>>, %arg4: memref<128x128xbf16, #tpu.memory_space<vmem>>, %arg5: memref<1x128xf32, #tpu.memory_space<vmem>>, %arg6: memref<16x128xf32, #tpu.memory_space<vmem>>) attributes {dimension_semantics = [#tpu.dimension_semantics<parallel>], iteration_bounds = array<i64: 1>, scalar_prefetch = 0 : i64, scratch_operands = 0 : i64, tpu.core_type = #tpu.core_type<tc>, window_params = [{transform_indices = @transform_0, window_bounds = array<i64: 16, 128>}, {pipeline_mode = #tpu.pipeline_mode<synchronous>, transform_indices = @transform_1, window_bounds = array<i64: 128, 128>}, {pipeline_mode = #tpu.pipeline_mode<synchronous>, transform_indices = @transform_2, window_bounds = array<i64: 1, 128>}, {pipeline_mode = #tpu.pipeline_mode<synchronous>, transform_indices = @transform_3, window_bounds = array<i64: 128, 128>}, {pipeline_mode = #tpu.pipeline_mode<synchronous>, transform_indices = @transform_4, window_bounds = array<i64: 1, 128>}, {transform_indices = @transform_5, window_bounds = array<i64: 16, 128>}]} {
    %c0 = arith.constant 0 : index
    %c0_0 = arith.constant 0 : index
    %0 = vector.load %arg1[%c0, %c0_0] : memref<16x128xbf16, #tpu.memory_space<vmem>>, vector<16x128xbf16>
    %c0_1 = arith.constant 0 : index
    %c0_2 = arith.constant 0 : index
    %1 = vector.load %arg2[%c0_1, %c0_2] : memref<128x128xbf16, #tpu.memory_space<vmem>>, vector<128x128xbf16>
    %cst = arith.constant dense<0.000000e+00> : vector<16x128xf32>
    %2 = tpu.matmul %0, %1, %cst {dimension_numbers = #tpu.dot_dimension_numbers<[1], [0], [0], [1], [0, 0, 1, 1], [], []>} : vector<16x128xbf16>, vector<128x128xbf16>, vector<16x128xf32> -> vector<16x128xf32>
    %c0_3 = arith.constant 0 : index
    %c0_4 = arith.constant 0 : index
    %3 = vector.load %arg3[%c0_3, %c0_4] : memref<1x128xf32, #tpu.memory_space<vmem>>, vector<1x128xf32>
    %4 = vector.broadcast %3 : vector<1x128xf32> to vector<16x128xf32>
    %5 = arith.addf %2, %4 : vector<16x128xf32>
    %cst_5 = arith.constant 0.000000e+00 : f32
    %6 = vector.broadcast %cst_5 : f32 to vector<16x128xf32>
    %7 = arith.maximumf %5, %6 : vector<16x128xf32>
    %8 = arith.truncf %7 : vector<16x128xf32> to vector<16x128xbf16>
    %c0_6 = arith.constant 0 : index
    %c0_7 = arith.constant 0 : index
    %9 = vector.load %arg4[%c0_6, %c0_7] : memref<128x128xbf16, #tpu.memory_space<vmem>>, vector<128x128xbf16>
    %cst_8 = arith.constant dense<0.000000e+00> : vector<16x128xf32>
    %10 = tpu.matmul %8, %9, %cst_8 {dimension_numbers = #tpu.dot_dimension_numbers<[1], [0], [0], [1], [0, 0, 1, 1], [], []>} : vector<16x128xbf16>, vector<128x128xbf16>, vector<16x128xf32> -> vector<16x128xf32>
    %c0_9 = arith.constant 0 : index
    %c0_10 = arith.constant 0 : index
    %11 = vector.load %arg5[%c0_9, %c0_10] : memref<1x128xf32, #tpu.memory_space<vmem>>, vector<1x128xf32>
    %12 = vector.broadcast %11 : vector<1x128xf32> to vector<16x128xf32>
    %13 = arith.addf %10, %12 : vector<16x128xf32>
    %14 = tpu.iota {dimensions = array<i32: 1>} : vector<16x128xi32>
    %c16_i32 = arith.constant 16 : i32
    %15 = vector.broadcast %c16_i32 : i32 to vector<16x128xi32>
    %16 = arith.cmpi slt, %14, %15 : vector<16x128xi32>
    %cst_11 = arith.constant -1.000000e+30 : f32
    %17 = vector.broadcast %cst_11 : f32 to vector<16x128xf32>
    %18 = arith.select %16, %13, %17 : vector<16x128xi1>, vector<16x128xf32>
    %cst_12 = arith.constant dense<0xFF800000> : vector<16xf32>
    %19 = vector.multi_reduction <maximumf>, %18, %cst_12 [1] : vector<16x128xf32> to vector<16xf32>
    %20 = vector.shape_cast %19 : vector<16xf32> to vector<16x1xf32>
    %21 = vector.broadcast %20 : vector<16x1xf32> to vector<16x128xf32>
    %22 = arith.subf %18, %21 : vector<16x128xf32>
    %23 = math.exp %22 : vector<16x128xf32>
    %cst_13 = arith.constant dense<0.000000e+00> : vector<16xf32>
    %24 = vector.multi_reduction <add>, %23, %cst_13 [1] : vector<16x128xf32> to vector<16xf32>
    %25 = vector.shape_cast %24 : vector<16xf32> to vector<16x1xf32>
    %26 = vector.broadcast %25 : vector<16x1xf32> to vector<16x128xf32>
    %27 = arith.divf %23, %26 : vector<16x128xf32>
    %c0_14 = arith.constant 0 : index
    %c0_15 = arith.constant 0 : index
    %28 = vector.load %arg6[%c0_14, %c0_15] : memref<16x128xf32, #tpu.memory_space<vmem>>, vector<16x128xf32>
    tpu.vector_store %arg6[%c0_14, %c0_15], %27 {strides = array<i32>} : memref<16x128xf32, #tpu.memory_space<vmem>>, vector<16x128xf32>,
    return
  }
  func.func @transform_0(%arg0: i32) -> (i32, i32) {
    %c0_i32 = arith.constant 0 : i32
    %c0_i32_0 = arith.constant 0 : i32
    return %arg0, %c0_i32 : i32, i32
  }
  func.func @transform_1(%arg0: i32) -> (i32, i32) {
    %c0_i32 = arith.constant 0 : i32
    %c0_i32_0 = arith.constant 0 : i32
    %c0_i32_1 = arith.constant 0 : i32
    return %c0_i32, %c0_i32_0 : i32, i32
  }
  func.func @transform_2(%arg0: i32) -> (i32, i32) {
    %c0_i32 = arith.constant 0 : i32
    %c0_i32_0 = arith.constant 0 : i32
    %c0_i32_1 = arith.constant 0 : i32
    return %c0_i32, %c0_i32_0 : i32, i32
  }
  func.func @transform_3(%arg0: i32) -> (i32, i32) {
    %c0_i32 = arith.constant 0 : i32
    %c0_i32_0 = arith.constant 0 : i32
    %c0_i32_1 = arith.constant 0 : i32
    return %c0_i32, %c0_i32_0 : i32, i32
  }
  func.func @transform_4(%arg0: i32) -> (i32, i32) {
    %c0_i32 = arith.constant 0 : i32
    %c0_i32_0 = arith.constant 0 : i32
    %c0_i32_1 = arith.constant 0 : i32
    return %c0_i32, %c0_i32_0 : i32, i32
  }
  func.func @transform_5(%arg0: i32) -> (i32, i32) {
    %c0_i32 = arith.constant 0 : i32
    %c0_i32_0 = arith.constant 0 : i32
    return %arg0, %c0_i32 : i32, i32
  }
}

</mosaic_0001>

<bundles_post_ra>
// kernel: tpu_custom_call.1
= control target key start
LH: loop header
LB: loop body
LE: loop exit
PB: predicated region body
PF: predicated region fallthrough
CT: control target
= control target key end

     0   :  { %10 = vsyncpa [#allocation3], 0  ;;  %s657_s0 = inlined_call_operand.hbm [shape: bf16[16,128], index: 0, kind: input, shape index: {}]   ;;  %s658_s1 = inlined_call_operand.hbm [shape: bf16[128,128], index: 1, kind: input, shape index: {}]   ;;  %s659_s2 = inlined_call_operand.vmem [shape: f32[1,128], index: 2, kind: input, shape index: {}]   ;;  %s660_s3 = inlined_call_operand.hbm [shape: bf16[128,128], index: 3, kind: input, shape index: {}]   ;;  %s661_s4 = inlined_call_operand.vmem [shape: f32[1,128], index: 4, kind: input, shape index: {}]   ;;  %s662_s5 = inlined_call_operand.hbm [shape: f32[16,128], index: 5, kind: output, shape index: {}]  }
   0x1   :  { %11 = vsyncpa [#allocation6], 0 }
   0x2   :  { %12 = vsyncpa [#allocation4], 0  ;;  %s547_s18 = smov [#allocation5]   ;;  %s548_s20 = smov [#allocation2]  }
   0x3   :  { %s30_s19 = sshll.u32 %s547_s18, 4  ;;  %s18_s21 = sshll.u32 %s548_s20, 4  ;;  %s31_s19 = int_to_ptr.vmem [resolvable:$true] %s30_s19  ;;  %s587_s21 = int_to_ptr.vmem [resolvable:$true] %s18_s21 }
   0x4   :  { %s453_s24 = scalar_lea.hbm %s658_s1, 1024 }
   0x5   :  { %p454_p0 = scmp.ne.s32.totalorder %s658_s1, %s453_s24  ;;  %p457_p1 = scmp.lt.u32.totalorder %s453_s24, %s658_s1 }
   0x7   :  { %p459_p2 = pnand %p457_p1, %p454_p0 }
   0x9   :  { %462 = shalt.err (!%p459_p2)
}
   0xa   :  { %s463_s29 = scalar_lea.vmem %s31_s19, 1024  ;;  %p468_p4 = scmp.lt.s32.totalorder %s31_s19, %s31_s19 }
   0xb   :  { %p464_p3 = scmp.ne.s32.totalorder %s31_s19, %s463_s29  ;;  %p469_p5 = scmp.lt.s32.totalorder %s463_s29, %s463_s29 }
   0xd   :  { %p470_p6 = por %p469_p5, %p468_p4 }
   0xf   :  { %p471_p7 = pnand %p470_p6, %p464_p3 }
  0x11   :  { %474 = shalt.err (!%p471_p7)
}
  0x12   :  { %s549_s30 = smov 64   ;;  %s550_s6 = smov 4  }
  0x13   :  { %36 = dma.hbm_to_vmem [thread:$0]  %s658_s1, 1024, %s31_s19, [#allocation6], %s549_s30, %s549_s30, %s550_s6  }
  0x14   :  { %s475_s11 = scalar_lea.hbm %s657_s0, 128 }
  0x15   :  { %p476_p8 = scmp.ne.s32.totalorder %s657_s0, %s475_s11  ;;  %p479_p9 = scmp.lt.u32.totalorder %s475_s11, %s657_s0 }
  0x17   :  { %p481_p10 = pnand %p479_p9, %p476_p8 }
  0x19   :  { %484 = shalt.err (!%p481_p10)
}
  0x1a   :  { %s485_s16 = scalar_lea.vmem %s587_s21, 128  ;;  %p490_p12 = scmp.lt.s32.totalorder %s587_s21, %s587_s21 }
  0x1b   :  { %p486_p11 = scmp.ne.s32.totalorder %s587_s21, %s485_s16  ;;  %p491_p13 = scmp.lt.s32.totalorder %s485_s16, %s485_s16 }
  0x1d   :  { %p492_p0 = por %p491_p13, %p490_p12 }
  0x1f   :  { %p493_p1 = pnand %p492_p0, %p486_p11 }
  0x21   :  { %496 = shalt.err (!%p493_p1)
}
  0x22   :  { %24 = dma.hbm_to_vmem [thread:$0]  %s657_s0, 128, %s587_s21, [#allocation3], %s549_s30, %s549_s30, %s550_s6  }
  0x23   :  { %s551_s18 = smov [#allocation7]   ;;  %s497_s23 = scalar_lea.hbm %s660_s3, 1024 }
  0x24   :  { %s44_s19 = sshll.u32 %s551_s18, 4  ;;  %p498_p2 = scmp.ne.s32.totalorder %s660_s3, %s497_s23  ;;  %s45_s19 = int_to_ptr.vmem [resolvable:$true] %s44_s19 }
  0x25   :  { %p501_p3 = scmp.lt.u32.totalorder %s497_s23, %s660_s3 }
  0x27   :  { %p503_p4 = pnand %p501_p3, %p498_p2 }
  0x29   :  { %506 = shalt.err (!%p503_p4)
}
  0x2a   :  { %s507_s28 = scalar_lea.vmem %s45_s19, 1024  ;;  %p512_p6 = scmp.lt.s32.totalorder %s45_s19, %s45_s19 }
  0x2b   :  { %p508_p5 = scmp.ne.s32.totalorder %s45_s19, %s507_s28  ;;  %p513_p7 = scmp.lt.s32.totalorder %s507_s28, %s507_s28 }
  0x2d   :  { %p514_p8 = por %p513_p7, %p512_p6 }
  0x2f   :  { %p515_p9 = pnand %p514_p8, %p508_p5 }
  0x31   :  { %518 = shalt.err (!%p515_p9)
}
  0x32   :  { %50 = dma.hbm_to_vmem [thread:$0]  %s660_s3, 1024, %s45_s19, [#allocation6], %s549_s30, %s549_s30, %s550_s6  }
  0x33   :  { %541 = dma.done.wait [#allocation3], 128  }
  0x34   :  { %542 = vsyncadd [#allocation3], 4294967168 }
  0x35   :  { %543 = dma.done.wait [#allocation6], 2048  }
  0x36   :  { %544 = vsyncadd [#allocation6], 4294965248  ;;  %v552_v0 = vmov 0.0   ;;  %vm553_vm0 = vmmov 0   ;;  %v428_v1 = vld [vmem:[#allocation5] sm:$0xff]   ;;  %v429_v2 = vld [vmem:[#allocation5 + $0x8] sm:$0xff]   ;;  %v298_v28 = vlaneseq }
  0x37   :  { %378 = vmatprep.subr.bf16.mxu0 %v552_v0  ;;  %394 = vmatprep.mubr.msk.bf16.mxu0 %vm553_vm0, %v552_v0  ;;  %v430_v3 = vld [vmem:[#allocation5 + $0x10] sm:$0xff]   ;;  %v437_v4 = vld [vmem:[#allocation7] sm:$0xff]   ;;  %v431_v5 = vld [vmem:[#allocation5 + $0x18] sm:$0xff]  }
  0x38   :  { %398 = vmatprep.subr.bf16.mxu1 %v552_v0  ;;  %414 = vmatprep.mubr.msk.bf16.mxu1 %vm553_vm0, %v552_v0  ;;  %v438_v6 = vld [vmem:[#allocation7 + $0x8] sm:$0xff]   ;;  %v432_v7 = vld [vmem:[#allocation5 + $0x20] sm:$0xff]   ;;  %v439_v8 = vld [vmem:[#allocation7 + $0x10] sm:$0xff]   ;;  %v299_v29 = vand.u32 127, %v298_v28 }
  0x39   :  { %379 = vmatpush3.bf16.msra.mxu0 %v428_v1  ;;  %399 = vmatpush3.bf16.msra.mxu1 %v437_v4  ;;  %v433_v9 = vld [vmem:[#allocation5 + $0x28] sm:$0xff]   ;;  %v440_v10 = vld [vmem:[#allocation7 + $0x18] sm:$0xff]   ;;  %v434_v11 = vld [vmem:[#allocation5 + $0x30] sm:$0xff]  }
  0x3a   :  { %380 = vmatprep.subr.bf16.mxu0 %v552_v0  ;;  %400 = vmatprep.subr.bf16.mxu1 %v552_v0  ;;  %v441_v12 = vld [vmem:[#allocation7 + $0x20] sm:$0xff]   ;;  %v435_v13 = vld [vmem:[#allocation5 + $0x38] sm:$0xff]   ;;  %v442_v14 = vld [vmem:[#allocation7 + $0x28] sm:$0xff]   ;;  %vm300_vm1 = vcmp.lt.s32.totalorder %v299_v29, 16 }
  0x3b   :  { %v436_v15 = vld [vmem:[#allocation2] sm:$0xff]   ;;  %v443_v16 = vld [vmem:[#allocation7 + $0x30] sm:$0xff]  }
  0x3c   :  { %v444_v17 = vld [vmem:[#allocation7 + $0x38] sm:$0xff]  }
  0x3d   :  { %381 = vmatpush3.bf16.msra.mxu0 %v429_v2  ;;  %401 = vmatpush3.bf16.msra.mxu1 %v438_v6  ;;  %v341_v18 = vld [vmem:[%s659_s2] ss:$0 sm:$0xff]  ;;  %s554_s2 = smov [#allocation8]  }
  0x3e   :  { %382 = vmatprep.subr.bf16.mxu0 %v552_v0  ;;  %402 = vmatprep.subr.bf16.mxu1 %v552_v0  ;;  %v351_v30 = vld [vmem:[%s661_s4] ss:$0 sm:$0xff]  ;;  %s328_s4 = sshll.u32 %s554_s2, 4  ;;  %s329_s4 = int_to_ptr.vmem [resolvable:$true] %s328_s4 }
  0x3f   :  { %s519_s7 = scalar_lea.vmem %s329_s4, 256  ;;  %p524_p11 = scmp.lt.s32.totalorder %s329_s4, %s329_s4 }
  0x40   :  { %p520_p10 = scmp.ne.s32.totalorder %s329_s4, %s519_s7  ;;  %p525_p12 = scmp.lt.s32.totalorder %s519_s7, %s519_s7 }
  0x41   :  { %383 = vmatpush3.bf16.msra.mxu0 %v430_v3  ;;  %403 = vmatpush3.bf16.msra.mxu1 %v439_v8 }
  0x42   :  { %384 = vmatprep.subr.bf16.mxu0 %v552_v0  ;;  %404 = vmatprep.subr.bf16.mxu1 %v552_v0  ;;  %p526_p13 = por %p525_p12, %p524_p11 }
  0x44   :  { %p527_p0 = pnand %p526_p13, %p520_p10 }
  0x45   :  { %385 = vmatpush3.bf16.msra.mxu0 %v431_v5  ;;  %405 = vmatpush3.bf16.msra.mxu1 %v440_v10 }
  0x46   :  { %386 = vmatprep.subr.bf16.mxu0 %v552_v0  ;;  %406 = vmatprep.subr.bf16.mxu1 %v552_v0 }
  0x49   :  { %387 = vmatpush3.bf16.msra.mxu0 %v432_v7  ;;  %407 = vmatpush3.bf16.msra.mxu1 %v441_v12 }
  0x4a   :  { %388 = vmatprep.subr.bf16.mxu0 %v552_v0  ;;  %408 = vmatprep.subr.bf16.mxu1 %v552_v0 }
  0x4d   :  { %389 = vmatpush3.bf16.msra.mxu0 %v433_v9  ;;  %409 = vmatpush3.bf16.msra.mxu1 %v442_v14 }
  0x4e   :  { %390 = vmatprep.subr.bf16.mxu0 %v552_v0  ;;  %410 = vmatprep.subr.bf16.mxu1 %v552_v0 }
  0x51   :  { %391 = vmatpush3.bf16.msra.mxu0 %v434_v11  ;;  %411 = vmatpush3.bf16.msra.mxu1 %v443_v16 }
  0x52   :  { %392 = vmatprep.subr.bf16.mxu0 %v552_v0  ;;  %412 = vmatprep.subr.bf16.mxu1 %v552_v0 }
  0x55   :  { %393 = vmatpush3.bf16.msra.mxu0 %v435_v13  ;;  %413 = vmatpush3.bf16.msra.mxu1 %v444_v17 }
  0x58   :  { %395 = vmatmul.mubr.bf16.vlgmr.msra.gmra.mrb[0].mxu0 %v436_v15 }
 0x12b   :  { %v176_v19 = vpop.f32.mrb[0].mxu0 }
 0x12c   :  { %v177_v20 = vadd.f32 %v341_v18, %v176_v19  ;;  %v396_v21 = vpop.f32.mrb[1].mxu0 }
 0x12d   :  { %v179_v22 = vpop.f32.mrb[2].mxu0 }
 0x12e   :  { %v180_v23 = vadd.f32 %v341_v18, %v179_v22  ;;  %v397_v24 = vpop.f32.mrb[3].mxu0  ;;  %v183_v25 = vmax.f32 %v177_v20, 0.0 }
 0x130   :  { %v184_v26 = vmax.f32 %v180_v23, 0.0 }
 0x132   :  { %v185_v27 = vpack.c.bf16 %v184_v26, %v183_v25 }
 0x134   :  { %415 = vmatmul.mubr.bf16.vlgmr.msra.gmra.mrb[0].mxu1 %v185_v27 }
 0x207   :  { %v291_v31 = vpop.f32.mrb[0].mxu1 }
 0x208   :  { %v292_v32 = vadd.f32 %v351_v30, %v291_v31  ;;  %v416_v33 = vpop.f32.mrb[1].mxu1 }
 0x209   :  { %v294_v34 = vpop.f32.mrb[2].mxu1 }
 0x20a   :  { %v295_v35 = vadd.f32 %v351_v30, %v294_v34  ;;  %v417_v36 = vpop.f32.mrb[3].mxu1  ;;  %v301_v37 = vsel %vm300_vm1, %v292_v32, -1e+30 }
 0x20b   :  { %303 = vmax.xlane.f32.xlu0 %v301_v37 }
 0x20c   :  { %v302_v38 = vsel %vm300_vm1, %v295_v35, -1e+30 }
 0x20f   :  { %305 = vmax.xlane.f32.xlu0 %v302_v38 }
 0x298   :  { %v304_v39 = vpop.xlane.xlu0 %303 }
 0x299   :  { %v307_v40 = vsub.f32 %v301_v37, %v304_v39 }
 0x29b   :  { %v309_v41 = vmul.f32 1.442695, %v307_v40 }
 0x29c   :  { %v306_v42 = vpop.xlane.xlu0 %305 }
 0x29d   :  { %445 = vpow2.f32 %v309_v41  ;;  %v308_v43 = vsub.f32 %v302_v38, %v306_v42 }
 0x29f   :  { %v311_v44 = vmul.f32 1.442695, %v308_v43 }
 0x2a1   :  { %447 = vpow2.f32 %v311_v44 }
 0x2a7   :  { %v446_v45 = vpop.eup %445 }
 0x2a8   :  { %313 = vadd.xlane.f32.xlu1 %v446_v45 }
 0x2ab   :  { %v448_v46 = vpop.eup %447 }
 0x2ac   :  { %315 = vadd.xlane.f32.xlu1 %v448_v46 }
 0x335   :  { %v314_v47 = vpop.xlane.xlu1 %313 }
 0x336   :  { %449 = vrcp.f32 %v314_v47 }
 0x339   :  { %v316_v48 = vpop.xlane.xlu1 %315 }
 0x33a   :  { %451 = vrcp.f32 %v316_v48 }
 0x340   :  { %v450_v49 = vpop.eup %449 }
 0x341   :  { %v318_v50 = vmul.f32 %v450_v49, %v446_v45 }
 0x343   :  { %321 = vst [vmem:[#allocation8] sm:$0xff] %v318_v50 }
 0x344   :  { %v452_v51 = vpop.eup %451 }
 0x345   :  { %v320_v52 = vmul.f32 %v452_v51, %v448_v46 }
 0x347   :  { %322 = vst [vmem:[#allocation8 + $0x8] sm:$0xff] %v320_v52 }
 0x348   :  { %530 = shalt.err (!%p527_p0)
}
 0x349   :  { %s531_s10 = scalar_lea.hbm %s662_s5, 256 }
 0x34a   :  { %p532_p1 = scmp.ne.s32.totalorder %s662_s5, %s531_s10  ;;  %p535_p2 = scmp.lt.u32.totalorder %s531_s10, %s662_s5 }
 0x34c   :  { %p537_p3 = pnand %p535_p2, %p532_p1 }
 0x34e   :  { %540 = shalt.err (!%p537_p3)
}
 0x34f   :  { %s555_s15 = smov 128   ;;  %s556_s16 = smov 8  }
 0x350   :  { %334 = dma.vmem_to_hbm [thread:$0]  %s329_s4, 256, %s662_s5, [#allocation4], %s555_s15, %s555_s15, %s556_s16  }
 0x351   :  { %545 = dma.done.wait [#allocation4], 256  }
 0x352   :  { %546 = vsyncadd [#allocation4], 4294967040 }
 0x353   :  { %338 = vsyncpa [#allocation3], 1 }
 0x354   :  { %339 = vsyncpa [#allocation6], 1 }
 0x355   :  { %340 = vsyncpa [#allocation4], 1 }

// kernel: tpu_custom_call.1
= control target key start
LH: loop header
LB: loop body
LE: loop exit
PB: predicated region body
PF: predicated region fallthrough
CT: control target
= control target key end

     0   :  { %10 = vsyncpa [#allocation3], 0  ;;  %s657_s0 = inlined_call_operand.hbm [shape: bf16[16,128], index: 0, kind: input, shape index: {}]   ;;  %s658_s1 = inlined_call_operand.hbm [shape: bf16[128,128], index: 1, kind: input, shape index: {}]   ;;  %s659_s2 = inlined_call_operand.vmem [shape: f32[1,128], index: 2, kind: input, shape index: {}]   ;;  %s660_s3 = inlined_call_operand.hbm [shape: bf16[128,128], index: 3, kind: input, shape index: {}]   ;;  %s661_s4 = inlined_call_operand.vmem [shape: f32[1,128], index: 4, kind: input, shape index: {}]   ;;  %s662_s5 = inlined_call_operand.hbm [shape: f32[16,128], index: 5, kind: output, shape index: {}]  }
   0x1   :  { %11 = vsyncpa [#allocation6], 0 }
   0x2   :  { %12 = vsyncpa [#allocation4], 0  ;;  %s547_s18 = smov [#allocation5]   ;;  %s548_s20 = smov [#allocation2]  }
   0x3   :  { %s30_s19 = sshll.u32 %s547_s18, 4  ;;  %s18_s21 = sshll.u32 %s548_s20, 4  ;;  %s31_s19 = int_to_ptr.vmem [resolvable:$true] %s30_s19  ;;  %s587_s21 = int_to_ptr.vmem [resolvable:$true] %s18_s21 }
   0x4   :  { %s453_s24 = scalar_lea.hbm %s658_s1, 1024 }
   0x5   :  { %p454_p0 = scmp.ne.s32.totalorder %s658_s1, %s453_s24  ;;  %p457_p1 = scmp.lt.u32.totalorder %s453_s24, %s658_s1 }
   0x7   :  { %p459_p2 = pnand %p457_p1, %p454_p0 }
   0x9   :  { %462 = shalt.err (!%p459_p2)
}
   0xa   :  { %s463_s29 = scalar_lea.vmem %s31_s19, 1024  ;;  %p468_p4 = scmp.lt.s32.totalorder %s31_s19, %s31_s19 }
   0xb   :  { %p464_p3 = scmp.ne.s32.totalorder %s31_s19, %s463_s29  ;;  %p469_p5 = scmp.lt.s32.totalorder %s463_s29, %s463_s29 }
   0xd   :  { %p470_p6 = por %p469_p5, %p468_p4 }
   0xf   :  { %p471_p7 = pnand %p470_p6, %p464_p3 }
  0x11   :  { %474 = shalt.err (!%p471_p7)
}
  0x12   :  { %s549_s30 = smov 64   ;;  %s550_s6 = smov 4  }
  0x13   :  { %36 = dma.hbm_to_vmem [thread:$0]  %s658_s1, 1024, %s31_s19, [#allocation6], %s549_s30, %s549_s30, %s550_s6  }
  0x14   :  { %s475_s11 = scalar_lea.hbm %s657_s0, 128 }
  0x15   :  { %p476_p8 = scmp.ne.s32.totalorder %s657_s0, %s475_s11  ;;  %p479_p9 = scmp.lt.u32.totalorder %s475_s11, %s657_s0 }
  0x17   :  { %p481_p10 = pnand %p479_p9, %p476_p8 }
  0x19   :  { %484 = shalt.err (!%p481_p10)
}
  0x1a   :  { %s485_s16 = scalar_lea.vmem %s587_s21, 128  ;;  %p490_p12 = scmp.lt.s32.totalorder %s587_s21, %s587_s21 }
  0x1b   :  { %p486_p11 = scmp.ne.s32.totalorder %s587_s21, %s485_s16  ;;  %p491_p13 = scmp.lt.s32.totalorder %s485_s16, %s485_s16 }
  0x1d   :  { %p492_p0 = por %p491_p13, %p490_p12 }
  0x1f   :  { %p493_p1 = pnand %p492_p0, %p486_p11 }
  0x21   :  { %496 = shalt.err (!%p493_p1)
}
  0x22   :  { %24 = dma.hbm_to_vmem [thread:$0]  %s657_s0, 128, %s587_s21, [#allocation3], %s549_s30, %s549_s30, %s550_s6  }
  0x23   :  { %s551_s18 = smov [#allocation7]   ;;  %s497_s23 = scalar_lea.hbm %s660_s3, 1024 }
  0x24   :  { %s44_s19 = sshll.u32 %s551_s18, 4  ;;  %p498_p2 = scmp.ne.s32.totalorder %s660_s3, %s497_s23  ;;  %s45_s19 = int_to_ptr.vmem [resolvable:$true] %s44_s19 }
  0x25   :  { %p501_p3 = scmp.lt.u32.totalorder %s497_s23, %s660_s3 }
  0x27   :  { %p503_p4 = pnand %p501_p3, %p498_p2 }
  0x29   :  { %506 = shalt.err (!%p503_p4)
}
  0x2a   :  { %s507_s28 = scalar_lea.vmem %s45_s19, 1024  ;;  %p512_p6 = scmp.lt.s32.totalorder %s45_s19, %s45_s19 }
  0x2b   :  { %p508_p5 = scmp.ne.s32.totalorder %s45_s19, %s507_s28  ;;  %p513_p7 = scmp.lt.s32.totalorder %s507_s28, %s507_s28 }
  0x2d   :  { %p514_p8 = por %p513_p7, %p512_p6 }
  0x2f   :  { %p515_p9 = pnand %p514_p8, %p508_p5 }
  0x31   :  { %518 = shalt.err (!%p515_p9)
}
  0x32   :  { %50 = dma.hbm_to_vmem [thread:$0]  %s660_s3, 1024, %s45_s19, [#allocation6], %s549_s30, %s549_s30, %s550_s6  }
  0x33   :  { %541 = dma.done.wait [#allocation3], 128  }
  0x34   :  { %542 = vsyncadd [#allocation3], 4294967168 }
  0x35   :  { %543 = dma.done.wait [#allocation6], 2048  }
  0x36   :  { %544 = vsyncadd [#allocation6], 4294965248  ;;  %v552_v0 = vmov 0.0   ;;  %vm553_vm0 = vmmov 0   ;;  %v428_v1 = vld [vmem:[#allocation5] sm:$0xff]   ;;  %v429_v2 = vld [vmem:[#allocation5 + $0x8] sm:$0xff]   ;;  %v298_v28 = vlaneseq }
  0x37   :  { %378 = vmatprep.subr.bf16.mxu0 %v552_v0  ;;  %394 = vmatprep.mubr.msk.bf16.mxu0 %vm553_vm0, %v552_v0  ;;  %v430_v3 = vld [vmem:[#allocation5 + $0x10] sm:$0xff]   ;;  %v437_v4 = vld [vmem:[#allocation7] sm:$0xff]   ;;  %v431_v5 = vld [vmem:[#allocation5 + $0x18] sm:$0xff]  }
  0x38   :  { %398 = vmatprep.subr.bf16.mxu1 %v552_v0  ;;  %414 = vmatprep.mubr.msk.bf16.mxu1 %vm553_vm0, %v552_v0  ;;  %v438_v6 = vld [vmem:[#allocation7 + $0x8] sm:$0xff]   ;;  %v432_v7 = vld [vmem:[#allocation5 + $0x20] sm:$0xff]   ;;  %v439_v8 = vld [vmem:[#allocation7 + $0x10] sm:$0xff]   ;;  %v299_v29 = vand.u32 127, %v298_v28 }
  0x39   :  { %379 = vmatpush3.bf16.msra.mxu0 %v428_v1  ;;  %399 = vmatpush3.bf16.msra.mxu1 %v437_v4  ;;  %v433_v9 = vld [vmem:[#allocation5 + $0x28] sm:$0xff]   ;;  %v440_v10 = vld [vmem:[#allocation7 + $0x18] sm:$0xff]   ;;  %v434_v11 = vld [vmem:[#allocation5 + $0x30] sm:$0xff]  }
  0x3a   :  { %380 = vmatprep.subr.bf16.mxu0 %v552_v0  ;;  %400 = vmatprep.subr.bf16.mxu1 %v552_v0  ;;  %v441_v12 = vld [vmem:[#allocation7 + $0x20] sm:$0xff]   ;;  %v435_v13 = vld [vmem:[#allocation5 + $0x38] sm:$0xff]   ;;  %v442_v14 = vld [vmem:[#allocation7 + $0x28] sm:$0xff]   ;;  %vm300_vm1 = vcmp.lt.s32.totalorder %v299_v29, 16 }
  0x3b   :  { %v436_v15 = vld [vmem:[#allocation2] sm:$0xff]   ;;  %v443_v16 = vld [vmem:[#allocation7 + $0x30] sm:$0xff]  }
  0x3c   :  { %v444_v17 = vld [vmem:[#allocation7 + $0x38] sm:$0xff]  }
  0x3d   :  { %381 = vmatpush3.bf16.msra.mxu0 %v429_v2  ;;  %401 = vmatpush3.bf16.msra.mxu1 %v438_v6  ;;  %v341_v18 = vld [vmem:[%s659_s2] ss:$0 sm:$0xff]  ;;  %s554_s2 = smov [#allocation8]  }
  0x3e   :  { %382 = vmatprep.subr.bf16.mxu0 %v552_v0  ;;  %402 = vmatprep.subr.bf16.mxu1 %v552_v0  ;;  %v351_v30 = vld [vmem:[%s661_s4] ss:$0 sm:$0xff]  ;;  %s328_s4 = sshll.u32 %s554_s2, 4  ;;  %s329_s4 = int_to_ptr.vmem [resolvable:$true] %s328_s4 }
  0x3f   :  { %s519_s7 = scalar_lea.vmem %s329_s4, 256  ;;  %p524_p11 = scmp.lt.s32.totalorder %s329_s4, %s329_s4 }
  0x40   :  { %p520_p10 = scmp.ne.s32.totalorder %s329_s4, %s519_s7  ;;  %p525_p12 = scmp.lt.s32.totalorder %s519_s7, %s519_s7 }
  0x41   :  { %383 = vmatpush3.bf16.msra.mxu0 %v430_v3  ;;  %403 = vmatpush3.bf16.msra.mxu1 %v439_v8 }
  0x42   :  { %384 = vmatprep.subr.bf16.mxu0 %v552_v0  ;;  %404 = vmatprep.subr.bf16.mxu1 %v552_v0  ;;  %p526_p13 = por %p525_p12, %p524_p11 }
  0x44   :  { %p527_p0 = pnand %p526_p13, %p520_p10 }
  0x45   :  { %385 = vmatpush3.bf16.msra.mxu0 %v431_v5  ;;  %405 = vmatpush3.bf16.msra.mxu1 %v440_v10 }
  0x46   :  { %386 = vmatprep.subr.bf16.mxu0 %v552_v0  ;;  %406 = vmatprep.subr.bf16.mxu1 %v552_v0 }
  0x49   :  { %387 = vmatpush3.bf16.msra.mxu0 %v432_v7  ;;  %407 = vmatpush3.bf16.msra.mxu1 %v441_v12 }
  0x4a   :  { %388 = vmatprep.subr.bf16.mxu0 %v552_v0  ;;  %408 = vmatprep.subr.bf16.mxu1 %v552_v0 }
  0x4d   :  { %389 = vmatpush3.bf16.msra.mxu0 %v433_v9  ;;  %409 = vmatpush3.bf16.msra.mxu1 %v442_v14 }
  0x4e   :  { %390 = vmatprep.subr.bf16.mxu0 %v552_v0  ;;  %410 = vmatprep.subr.bf16.mxu1 %v552_v0 }
  0x51   :  { %391 = vmatpush3.bf16.msra.mxu0 %v434_v11  ;;  %411 = vmatpush3.bf16.msra.mxu1 %v443_v16 }
  0x52   :  { %392 = vmatprep.subr.bf16.mxu0 %v552_v0  ;;  %412 = vmatprep.subr.bf16.mxu1 %v552_v0 }
  0x55   :  { %393 = vmatpush3.bf16.msra.mxu0 %v435_v13  ;;  %413 = vmatpush3.bf16.msra.mxu1 %v444_v17 }
  0x58   :  { %395 = vmatmul.mubr.bf16.vlgmr.msra.gmra.mrb[0].mxu0 %v436_v15 }
 0x12b   :  { %v176_v19 = vpop.f32.mrb[0].mxu0 }
 0x12c   :  { %v177_v20 = vadd.f32 %v341_v18, %v176_v19  ;;  %v396_v21 = vpop.f32.mrb[1].mxu0 }
 0x12d   :  { %v179_v22 = vpop.f32.mrb[2].mxu0 }
 0x12e   :  { %v180_v23 = vadd.f32 %v341_v18, %v179_v22  ;;  %v397_v24 = vpop.f32.mrb[3].mxu0  ;;  %v183_v25 = vmax.f32 %v177_v20, 0.0 }
 0x130   :  { %v184_v26 = vmax.f32 %v180_v23, 0.0 }
 0x132   :  { %v185_v27 = vpack.c.bf16 %v184_v26, %v183_v25 }
 0x134   :  { %415 = vmatmul.mubr.bf16.vlgmr.msra.gmra.mrb[0].mxu1 %v185_v27 }
 0x207   :  { %v291_v31 = vpop.f32.mrb[0].mxu1 }
 0x208   :  { %v292_v32 = vadd.f32 %v351_v30, %v291_v31  ;;  %v416_v33 = vpop.f32.mrb[1].mxu1 }
 0x209   :  { %v294_v34 = vpop.f32.mrb[2].mxu1 }
 0x20a   :  { %v295_v35 = vadd.f32 %v351_v30, %v294_v34  ;;  %v417_v36 = vpop.f32.mrb[3].mxu1  ;;  %v301_v37 = vsel %vm300_vm1, %v292_v32, -1e+30 }
 0x20b   :  { %303 = vmax.xlane.f32.xlu0 %v301_v37 }
 0x20c   :  { %v302_v38 = vsel %vm300_vm1, %v295_v35, -1e+30 }
 0x20f   :  { %305 = vmax.xlane.f32.xlu0 %v302_v38 }
 0x298   :  { %v304_v39 = vpop.xlane.xlu0 %303 }
 0x299   :  { %v307_v40 = vsub.f32 %v301_v37, %v304_v39 }
 0x29b   :  { %v309_v41 = vmul.f32 1.442695, %v307_v40 }
 0x29c   :  { %v306_v42 = vpop.xlane.xlu0 %305 }
 0x29d   :  { %445 = vpow2.f32 %v309_v41  ;;  %v308_v43 = vsub.f32 %v302_v38, %v306_v42 }
 0x29f   :  { %v311_v44 = vmul.f32 1.442695, %v308_v43 }
 0x2a1   :  { %447 = vpow2.f32 %v311_v44 }
 0x2a7   :  { %v446_v45 = vpop.eup %445 }
 0x2a8   :  { %313 = vadd.xlane.f32.xlu1 %v446_v45 }
 0x2ab   :  { %v448_v46 = vpop.eup %447 }
 0x2ac   :  { %315 = vadd.xlane.f32.xlu1 %v448_v46 }
 0x335   :  { %v314_v47 = vpop.xlane.xlu1 %313 }
 0x336   :  { %449 = vrcp.f32 %v314_v47 }
 0x339   :  { %v316_v48 = vpop.xlane.xlu1 %315 }
 0x33a   :  { %451 = vrcp.f32 %v316_v48 }
 0x340   :  { %v450_v49 = vpop.eup %449 }
 0x341   :  { %v318_v50 = vmul.f32 %v450_v49, %v446_v45 }
 0x343   :  { %321 = vst [vmem:[#allocation8] sm:$0xff] %v318_v50 }
 0x344   :  { %v452_v51 = vpop.eup %451 }
 0x345   :  { %v320_v52 = vmul.f32 %v452_v51, %v448_v46 }
 0x347   :  { %322 = vst [vmem:[#allocation8 + $0x8] sm:$0xff] %v320_v52 }
 0x348   :  { %530 = shalt.err (!%p527_p0)
}
 0x349   :  { %s531_s10 = scalar_lea.hbm %s662_s5, 256 }
 0x34a   :  { %p532_p1 = scmp.ne.s32.totalorder %s662_s5, %s531_s10  ;;  %p535_p2 = scmp.lt.u32.totalorder %s531_s10, %s662_s5 }
 0x34c   :  { %p537_p3 = pnand %p535_p2, %p532_p1 }
 0x34e   :  { %540 = shalt.err (!%p537_p3)
}
 0x34f   :  { %s555_s15 = smov 128   ;;  %s556_s16 = smov 8  }
 0x350   :  { %334 = dma.vmem_to_hbm [thread:$0]  %s329_s4, 256, %s662_s5, [#allocation4], %s555_s15, %s555_s15, %s556_s16  }
 0x351   :  { %545 = dma.done.wait [#allocation4], 256  }
 0x352   :  { %546 = vsyncadd [#allocation4], 4294967040 }
 0x353   :  { %338 = vsyncpa [#allocation3], 1 }
 0x354   :  { %339 = vsyncpa [#allocation6], 1 }
 0x355   :  { %340 = vsyncpa [#allocation4], 1 }

</bundles_post_ra>
